<compile_context>
chip_gen: v6e
topology: v6e:2x2x1
jax: 0.10.0
libtpu: 0.0.40
codegen_flags: <defaults>
</compile_context>

<pallas_src>
import functools
import math

import numpy as np
import jax
import jax.numpy as jnp
from jax.experimental import pallas as pl
from jax.experimental.pallas import tpu as pltpu

_NEG_INF = -1e9


# ----------------------------- small helpers -----------------------------
def _layer_norm(x, gamma, beta, eps=1e-5):
    # x: (rows, D) f32; gamma/beta: (1, D) f32.  PyTorch LayerNorm (biased var).
    mean = jnp.mean(x, axis=-1, keepdims=True)
    var = jnp.mean((x - mean) ** 2, axis=-1, keepdims=True)
    return (x - mean) * jax.lax.rsqrt(var + eps) * gamma + beta


def _vmem_limit(needed_bytes):
    """Generation-aware VMEM budget: cap at 90% of physical capacity."""
    try:
        cap = pltpu.get_tpu_info().vmem_capacity_bytes
    except Exception:
        cap = 64 * 2 ** 20  # conservative (v7x per-core) fallback
    return int(min(int(0.9 * cap), max(needed_bytes, 16 * 2 ** 20)))


def _weight_spec(shape):
    """Weights: same block every grid step -> VMEM-resident, single-buffered."""
    ndim = len(shape)

    def idx_map(*_):
        return (0,) * ndim

    return pl.BlockSpec(shape, idx_map, pipeline_mode=pl.Buffered(1))


def _pick_row_tile(n, cap=512):
    """Largest multiple-of-8 divisor of n that is <= cap (n itself if n <= cap)."""
    if n <= cap:
        return n
    t = cap - cap % 8
    while t >= 8:
        if n % t == 0:
            return t
        t -= 8
    return n


def _pick_seq_tile(n, cap):
    """Seq tile: full axis when small, otherwise a multiple-of-128 divisor <= cap."""
    if n <= cap:
        return n
    t = cap - cap % 128
    while t >= 128:
        if n % t == 0:
            return t
        t -= 128
    return n


def _prepare_mask(mask):
    """int8 (B,S,S) mask (1 = attend) or None when absent / statically all-True."""
    if mask is None:
        return None
    try:
        concrete = np.asarray(mask)  # raises on tracers
        if concrete.all():
            return None              # trivially-true mask: skip DMA + adds entirely
    except Exception:
        pass
    return jnp.asarray(mask).astype(jnp.int8)


# ----------------------- kernel 1: LN1 + fused QKV proj -----------------------
def qkv_proj_kernel(x_ref, g_ref, b_ref, wqkv_ref, qkv_ref):
    x = x_ref[...].astype(jnp.float32)                        # (TM, D)
    xn = _layer_norm(x, g_ref[...], b_ref[...])
    qkv = jnp.dot(xn.astype(wqkv_ref.dtype), wqkv_ref[...],
                  preferred_element_type=jnp.float32)         # (TM, 3D)
    qkv_ref[...] = qkv.astype(qkv_ref.dtype)


def qkv_projection(x, g1, b1, wqkv):
    """x: (B, S, D) bf16 -> qkv: (B, S, 3D) bf16, with LN1 fused in."""
    B, S, D = x.shape
    BS = B * S
    x2 = x.reshape(BS, D)
    TM = _pick_row_tile(BS, cap=512)

    needed = (2 * TM * D * 2                # x blocks (double-buffered, bf16)
              + 2 * TM * 3 * D * 2          # qkv out blocks (bf16)
              + D * 3 * D * 2 + 2 * D * 4   # weights (single-buffered)
              + TM * D * 4 + TM * 3 * D * 4)  # f32 intermediates (xn, qkv acc)

    grid_spec = pltpu.PrefetchScalarGridSpec(
        num_scalar_prefetch=0,
        grid=(BS // TM,),
        in_specs=[pl.BlockSpec((TM, D), lambda i: (i, 0)),
                  _weight_spec((1, D)), _weight_spec((1, D)),
                  _weight_spec((D, 3 * D))],
        out_specs=pl.BlockSpec((TM, 3 * D), lambda i: (i, 0)),
    )
    qkv = pl.pallas_call(
        qkv_proj_kernel,
        out_shape=jax.ShapeDtypeStruct((BS, 3 * D), x.dtype),
        grid_spec=grid_spec,
        compiler_params=pltpu.CompilerParams(
            dimension_semantics=("parallel",),
            vmem_limit_bytes=_vmem_limit(2 * needed)),
    )(x2, g1, b1, wqkv)
    return qkv.reshape(B, S, 3 * D)


# --------------- kernel 2: flash attention + out-proj + FFN + residuals ---------------
def attn_ffn_kernel(*refs, n_heads, has_mask):
    if has_mask:
        mask_ref = refs[0]
        refs = refs[1:]
    else:
        mask_ref = None
    (x_ref, q_ref, k_ref, v_ref,
     wo_ref, g2_ref, be2_ref, w1_ref, bias1_ref, w2_ref, bias2_ref,
     o_ref, m_scr, l_scr, acc_scr) = refs

    ki = pl.program_id(2)
    n_kv = pl.num_programs(2)
    TQ, D = q_ref.shape
    H = n_heads
    Dh = D // H
    cdt = wo_ref.dtype                       # bf16 compute dtype for MXU operands
    scale = 1.0 / math.sqrt(Dh)

    @pl.when(ki == 0)
    def _():
        m_scr[...] = jnp.full_like(m_scr, -jnp.inf)
        l_scr[...] = jnp.zeros_like(l_scr)
        acc_scr[...] = jnp.zeros_like(acc_scr)

    if has_mask:
        # 1 = attend, 0 = masked; computed ONCE per KV tile (hoisted out of head loop).
        mask_add = jnp.where(mask_ref[...] > 0, 0.0, _NEG_INF).astype(jnp.float32)

    q = q_ref[...]                            # (TQ, D) bf16
    k = k_ref[...]                            # (TK, D) bf16
    v = v_ref[...]                            # (TK, D) bf16

    for h in range(H):                        # static head loop; Dh=128 -> lane-aligned
        sl = slice(h * Dh, (h + 1) * Dh)
        s = jax.lax.dot_general(q[:, sl], k[:, sl], (((1,), (1,)), ((), ())),
                                preferred_element_type=jnp.float32) * scale
        if has_mask:
            s = s + mask_add
        m_prev = m_scr[h]                     # (TQ, 1)
        m_new = jnp.maximum(m_prev, jnp.max(s, axis=-1, keepdims=True))
        alpha = jnp.exp(m_prev - m_new)
        p = jnp.exp(s - m_new)
        l_scr[h] = alpha * l_scr[h] + jnp.sum(p, axis=-1, keepdims=True)
        acc_scr[:, sl] = alpha * acc_scr[:, sl] + jnp.dot(
            p.astype(cdt), v[:, sl], preferred_element_type=jnp.float32)
        m_scr[h] = m_new

    @pl.when(ki == n_kv - 1)
    def _():
        # Normalize the per-head context in place (no concatenate), then one
        # (TQ,D)@(D,D) output projection.
        for h in range(H):
            sl = slice(h * Dh, (h + 1) * Dh)
            acc_scr[:, sl] = acc_scr[:, sl] * pl.reciprocal(l_scr[h], approx=True)
        ctx = acc_scr[...].astype(cdt)                                # (TQ, D)
        attn_out = jnp.dot(ctx, wo_ref[...],
                           preferred_element_type=jnp.float32)
        res = attn_out + x_ref[...].astype(jnp.float32)               # pre-LN residual

        ffn_in = _layer_norm(res, g2_ref[...], be2_ref[...])
        h1 = jnp.dot(ffn_in.astype(cdt), w1_ref[...],
                     preferred_element_type=jnp.float32) + bias1_ref[...]
        h1 = jnp.maximum(h1, 0.0)
        dense_out = jnp.dot(h1.astype(cdt), w2_ref[...],
                            preferred_element_type=jnp.float32) + bias2_ref[...]
        # nn.Dropout output (dense_drop) is discarded in the reference forward
        # (`return dense_out + inputs`), so no dropout is applied here.
        o_ref[...] = (dense_out + res).astype(o_ref.dtype)


def attention_ffn(x, qkv, mask_i8, p, n_heads, tq_cap=256, tk_cap=512):
    """Flash attention + output projection + FFN sub-block for one layer."""
    B, S, D = x.shape
    F = p["w1"].shape[1]
    H = n_heads
    assert D % H == 0
    has_mask = mask_i8 is not None

    TQ = _pick_seq_tile(S, tq_cap)
    TK = _pick_seq_tile(S, tk_cap)
    n_q, n_kv = S // TQ, S // TK

    kernel = functools.partial(attn_ffn_kernel, n_heads=H, has_mask=has_mask)

    in_specs = []
    operands = []
    if has_mask:
        in_specs.append(pl.BlockSpec((pl.Squeezed(), TQ, TK),
                                     lambda b, qi, ki: (b, qi, ki)))
        operands.append(mask_i8)
    in_specs += [
        pl.BlockSpec((pl.Squeezed(), TQ, D), lambda b, qi, ki: (b, qi, 0)),  # x (residual)
        pl.BlockSpec((pl.Squeezed(), TQ, D), lambda b, qi, ki: (b, qi, 0)),  # Q slice of qkv
        pl.BlockSpec((pl.Squeezed(), TK, D), lambda b, qi, ki: (b, ki, 1)),  # K slice of qkv
        pl.BlockSpec((pl.Squeezed(), TK, D), lambda b, qi, ki: (b, ki, 2)),  # V slice of qkv
        _weight_spec((D, D)),                                                 # Wo (bf16)
        _weight_spec((1, D)), _weight_spec((1, D)),                           # LN2 gamma/beta
        _weight_spec((D, F)), _weight_spec((1, F)),                           # W1 (bf16), b1
        _weight_spec((F, D)), _weight_spec((1, D)),                           # W2 (bf16), b2
    ]
    operands += [x, qkv, qkv, qkv,
                 p["wo"], p["g2"], p["b2"],
                 p["w1"], p["bias1"], p["w2"], p["bias2"]]

    # Explicit VMEM budget: I/O blocks (weights single-buffered) + scratch +
    # the f32 intermediates that actually dominate (scores / exp / h1 / res).
    needed = (
        (2 * TQ * TK if has_mask else 0)                      # int8 mask blocks
        + 2 * 2 * TQ * D * 2                                  # x + Q blocks (bf16, dbl-buf)
        + 2 * 2 * TK * D * 2                                  # K + V blocks (bf16, dbl-buf)
        + 2 * TQ * D * 2                                      # output blocks (bf16)
        + (D * D + 2 * D * F) * 2 + (4 * D + F) * 4           # weights + LN/bias params
        + (2 * H * TQ * 128 + TQ * D) * 4                     # m/l/acc scratch (lane-padded)
        + (3 * TQ * TK + TQ * F + 4 * TQ * D) * 4             # f32 intermediates
    )

    grid_spec = pltpu.PrefetchScalarGridSpec(
        num_scalar_prefetch=0,
        grid=(B, n_q, n_kv),
        in_specs=in_specs,
        out_specs=pl.BlockSpec((pl.Squeezed(), TQ, D), lambda b, qi, ki: (b, qi, 0)),
        scratch_shapes=[pltpu.VMEM((H, TQ, 1), jnp.float32),   # running max
                        pltpu.VMEM((H, TQ, 1), jnp.float32),   # running denominator
                        pltpu.VMEM((TQ, D), jnp.float32)],     # per-head context accumulator
    )
    return pl.pallas_call(
        kernel,
        out_shape=jax.ShapeDtypeStruct((B, S, D), x.dtype),
        grid_spec=grid_spec,
        compiler_params=pltpu.CompilerParams(
            dimension_semantics=("parallel", "parallel", "arbitrary"),
            vmem_limit_bytes=_vmem_limit(2 * needed)),
    )(*operands)


def encoder_block(x, mask_i8, p, n_heads):
    """One pre-LN TransformerEncoderBlock over a (B, S, D) bf16 activation tensor."""
    qkv = qkv_projection(x, p["g1"], p["b1"], p["wqkv"])
    return attention_ffn(x, qkv, mask_i8, p, n_heads)


# ----------------------------- parameter setup -----------------------------
def _xavier_uniform(key, fan_in, fan_out):
    bound = math.sqrt(6.0 / (fan_in + fan_out))
    return jax.random.uniform(key, (fan_in, fan_out), jnp.float32, -bound, bound)


def init_encoder_block_params(key, d_model, d_filter):
    ks = jax.random.split(key, 6)
    return dict(
        g1=jnp.ones((1, d_model), jnp.float32),
        b1=jnp.zeros((1, d_model), jnp.float32),
        wq=_xavier_uniform(ks[0], d_model, d_model),
        wk=_xavier_uniform(ks[1], d_model, d_model),
        wv=_xavier_uniform(ks[2], d_model, d_model),
        wo=_xavier_uniform(ks[3], d_model, d_model),
        g2=jnp.ones((1, d_model), jnp.float32),
        b2=jnp.zeros((1, d_model), jnp.float32),
        w1=_xavier_uniform(ks[4], d_model, d_filter),
        bias1=jnp.zeros((1, d_filter), jnp.float32),
        w2=_xavier_uniform(ks[5], d_filter, d_model),
        bias2=jnp.zeros((1, d_model), jnp.float32),
    )


def pack_encoder_block_params(p, compute_dtype=jnp.bfloat16):
    """Fuse Wq|Wk|Wv into one (D, 3D) weight; cast matmul weights to bf16
    (accumulation stays f32 in-kernel; LN params and biases stay f32).
    TODO(synk): the reference's custom MultiHeadAttention definition is not
    provided; q/k/v/o projections are assumed bias-free."""
    return dict(
        g1=p["g1"], b1=p["b1"], g2=p["g2"], b2=p["b2"],
        wqkv=jnp.concatenate([p["wq"], p["wk"], p["wv"]],
                             axis=1).astype(compute_dtype),
        wo=p["wo"].astype(compute_dtype),
        w1=p["w1"].astype(compute_dtype), bias1=p["bias1"],
        w2=p["w2"].astype(compute_dtype), bias2=p["bias2"],
    )


class SimpleEmbedding:
    """Stand-in for `embedding_layer` (token-id lookup); glue, not hot path."""

    def __init__(self, key, vocab_size, embed_size):
        self.embed_size = embed_size
        self.table = 0.02 * jax.random.normal(key, (vocab_size, embed_size),
                                              jnp.float32)

    def __call__(self, ids):
        return jnp.take(self.table, ids, axis=0)


def transformer_encoder(token_ids, embedding, layer_params, n_heads,
                        encoder_mask=None):
    # bf16 activation stream between layers; f32 math inside the kernels.
    x = embedding(token_ids).astype(jnp.bfloat16)          # (B, S, D)
    # Mask convention: 1/True = attend, 0/False = masked (as in the homework spec).
    mask_i8 = _prepare_mask(encoder_mask)
    out = x
    # TODO(synk): prefetch layer-(i+1) weights behind layer-i compute (P10), or
    # fuse the layer stack into a single pallas_call with stacked (L, ...) weights.
    for p in layer_params:
        out = encoder_block(out, mask_i8, p, n_heads)
    return out.astype(jnp.float32)


if __name__ == "__main__":
    # Small but lane-dense shapes: batch=2, seq=32, d_model=256, n_heads=2
    # (head_dim=128), d_filter=512, 2 layers.
    B, S, D, H, Fdim, L, VOCAB = 2, 32, 256, 2, 512, 2, 64
    root = jax.random.PRNGKey(0)
    k_emb, k_ids, *k_layers = jax.random.split(root, 2 + L)

    embedding = SimpleEmbedding(k_emb, VOCAB, D)
    layer_params = [pack_encoder_block_params(init_encoder_block_params(k, D, Fdim))
                    for k in k_layers]

    token_ids = jax.random.randint(k_ids, (B, S), 0, VOCAB, dtype=jnp.int32)

    # 1) non-trivial (causal) mask: exercises the int8 mask tile path.
    causal_mask = jnp.broadcast_to(jnp.tril(jnp.ones((S, S), jnp.bool_)), (B, S, S))
    out_masked = jax.block_until_ready(
        transformer_encoder(token_ids, embedding, layer_params, H,
                            encoder_mask=causal_mask))

    # 2) statically all-True mask: exercises the "drop the mask stream" path.
    out_full = jax.block_until_ready(
        transformer_encoder(token_ids, embedding, layer_params, H,
                            encoder_mask=jnp.ones((B, S, S), jnp.bool_)))

    for out in (out_masked, out_full):
        assert out.shape == (B, S, D) and out.dtype == jnp.float32
        assert bool(jnp.all(jnp.isfinite(out)))
    print("KERNEL_OK")
</pallas_src>

<mosaic_0001>
module attributes {stable_mosaic.version = 11 : i64} {
  func.func @qkv_proj_kernel(%arg0: i32, %arg1: memref<64x256xbf16, #tpu.memory_space<vmem>>, %arg2: memref<1x256xf32, #tpu.memory_space<vmem>>, %arg3: memref<1x256xf32, #tpu.memory_space<vmem>>, %arg4: memref<256x768xbf16, #tpu.memory_space<vmem>>, %arg5: memref<64x768xbf16, #tpu.memory_space<vmem>>) attributes {dimension_semantics = [#tpu.dimension_semantics<parallel>], iteration_bounds = array<i64: 1>, scalar_prefetch = 0 : i64, scratch_operands = 0 : i64, tpu.core_type = #tpu.core_type<tc>, window_params = [{transform_indices = @transform_0, window_bounds = array<i64: 64, 256>}, {pipeline_mode = #tpu.pipeline_mode<synchronous>, transform_indices = @transform_1, window_bounds = array<i64: 1, 256>}, {pipeline_mode = #tpu.pipeline_mode<synchronous>, transform_indices = @transform_2, window_bounds = array<i64: 1, 256>}, {pipeline_mode = #tpu.pipeline_mode<synchronous>, transform_indices = @transform_3, window_bounds = array<i64: 256, 768>}, {transform_indices = @transform_4, window_bounds = array<i64: 64, 768>}]} {
    %c0 = arith.constant 0 : index
    %c0_0 = arith.constant 0 : index
    %0 = vector.load %arg1[%c0, %c0_0] : memref<64x256xbf16, #tpu.memory_space<vmem>>, vector<64x256xbf16>
    %1 = arith.extf %0 : vector<64x256xbf16> to vector<64x256xf32>
    %c0_1 = arith.constant 0 : index
    %c0_2 = arith.constant 0 : index
    %2 = vector.load %arg2[%c0_1, %c0_2] : memref<1x256xf32, #tpu.memory_space<vmem>>, vector<1x256xf32>
    %c0_3 = arith.constant 0 : index
    %c0_4 = arith.constant 0 : index
    %3 = vector.load %arg3[%c0_3, %c0_4] : memref<1x256xf32, #tpu.memory_space<vmem>>, vector<1x256xf32>
    %cst = arith.constant dense<0.000000e+00> : vector<64xf32>
    %4 = vector.multi_reduction <add>, %1, %cst [1] : vector<64x256xf32> to vector<64xf32>
    %5 = vector.shape_cast %4 : vector<64xf32> to vector<64x1xf32>
    %cst_5 = arith.constant 2.560000e+02 : f32
    %6 = vector.broadcast %cst_5 : f32 to vector<64x1xf32>
    %7 = arith.divf %5, %6 : vector<64x1xf32>
    %8 = vector.broadcast %7 : vector<64x1xf32> to vector<64x256xf32>
    %9 = arith.subf %1, %8 : vector<64x256xf32>
    %10 = arith.mulf %9, %9 : vector<64x256xf32>
    %cst_6 = arith.constant dense<0.000000e+00> : vector<64xf32>
    %11 = vector.multi_reduction <add>, %10, %cst_6 [1] : vector<64x256xf32> to vector<64xf32>
    %12 = vector.shape_cast %11 : vector<64xf32> to vector<64x1xf32>
    %cst_7 = arith.constant 2.560000e+02 : f32
    %13 = vector.broadcast %cst_7 : f32 to vector<64x1xf32>
    %14 = arith.divf %12, %13 : vector<64x1xf32>
    %15 = vector.broadcast %7 : vector<64x1xf32> to vector<64x256xf32>
    %16 = arith.subf %1, %15 : vector<64x256xf32>
    %cst_8 = arith.constant 9.99999974E-6 : f32
    %17 = vector.broadcast %cst_8 : f32 to vector<64x1xf32>
    %18 = arith.addf %14, %17 : vector<64x1xf32>
    %19 = math.rsqrt %18 : vector<64x1xf32>
    %20 = vector.broadcast %19 : vector<64x1xf32> to vector<64x256xf32>
    %21 = arith.mulf %16, %20 : vector<64x256xf32>
    %22 = vector.broadcast %2 : vector<1x256xf32> to vector<64x256xf32>
    %23 = arith.mulf %21, %22 : vector<64x256xf32>
    %24 = vector.broadcast %3 : vector<1x256xf32> to vector<64x256xf32>
    %25 = arith.addf %23, %24 : vector<64x256xf32>
    %26 = arith.truncf %25 : vector<64x256xf32> to vector<64x256xbf16>
    %c0_9 = arith.constant 0 : index
    %c0_10 = arith.constant 0 : index
    %27 = vector.load %arg4[%c0_9, %c0_10] : memref<256x768xbf16, #tpu.memory_space<vmem>>, vector<256x768xbf16>
    %cst_11 = arith.constant dense<0.000000e+00> : vector<64x768xf32>
    %28 = tpu.matmul %26, %27, %cst_11 {dimension_numbers = #tpu.dot_dimension_numbers<[1], [0], [0], [1], [0, 0, 1, 1], [], []>} : vector<64x256xbf16>, vector<256x768xbf16>, vector<64x768xf32> -> vector<64x768xf32>
    %29 = arith.truncf %28 : vector<64x768xf32> to vector<64x768xbf16>
    %c0_12 = arith.constant 0 : index
    %c0_13 = arith.constant 0 : index
    %30 = vector.load %arg5[%c0_12, %c0_13] : memref<64x768xbf16, #tpu.memory_space<vmem>>, vector<64x768xbf16>
    tpu.vector_store %arg5[%c0_12, %c0_13], %29 {strides = array<i32>} : memref<64x768xbf16, #tpu.memory_space<vmem>>, vector<64x768xbf16>,
    return
  }
  func.func @transform_0(%arg0: i32) -> (i32, i32) {
    %c0_i32 = arith.constant 0 : i32
    %c0_i32_0 = arith.constant 0 : i32
    return %arg0, %c0_i32 : i32, i32
  }
  func.func @transform_1(%arg0: i32) -> (i32, i32) {
    %c0_i32 = arith.constant 0 : i32
    %c0_i32_0 = arith.constant 0 : i32
    %c0_i32_1 = arith.constant 0 : i32
    return %c0_i32, %c0_i32_0 : i32, i32
  }
  func.func @transform_2(%arg0: i32) -> (i32, i32) {
    %c0_i32 = arith.constant 0 : i32
    %c0_i32_0 = arith.constant 0 : i32
    %c0_i32_1 = arith.constant 0 : i32
    return %c0_i32, %c0_i32_0 : i32, i32
  }
  func.func @transform_3(%arg0: i32) -> (i32, i32) {
    %c0_i32 = arith.constant 0 : i32
    %c0_i32_0 = arith.constant 0 : i32
    %c0_i32_1 = arith.constant 0 : i32
    return %c0_i32, %c0_i32_0 : i32, i32
  }
  func.func @transform_4(%arg0: i32) -> (i32, i32) {
    %c0_i32 = arith.constant 0 : i32
    %c0_i32_0 = arith.constant 0 : i32
    return %arg0, %c0_i32 : i32, i32
  }
}

</mosaic_0001>

<bundles_post_ra>
// kernel: tpu_custom_call.1
= control target key start
LH: loop header
LB: loop body
LE: loop exit
PB: predicated region body
PF: predicated region fallthrough
CT: control target
= control target key end

     0   :  { %9 = vsyncpa [#allocation3], 0  ;;  %s1990_s0 = inlined_call_operand.hbm [shape: bf16[64,256], index: 0, kind: input, shape index: {}]   ;;  %s1991_s1 = inlined_call_operand.hbm [shape: f32[1,256], index: 1, kind: input, shape index: {}]   ;;  %s1992_s2 = inlined_call_operand.vmem [shape: f32[1,256], index: 2, kind: input, shape index: {}]   ;;  %s1993_s3 = inlined_call_operand.hbm [shape: bf16[256,768], index: 3, kind: input, shape index: {}]   ;;  %s1994_s4 = inlined_call_operand.hbm [shape: bf16[64,768], index: 4, kind: output, shape index: {}]  }
   0x1   :  { %10 = vsyncpa [#allocation6], 0 }
   0x2   :  { %11 = vsyncpa [#allocation4], 0  ;;  %s1685_s15 = smov [#allocation5]   ;;  %s1686_s17 = smov [#allocation2]  }
   0x3   :  { %s30_s16 = sshll.u32 %s1685_s15, 4  ;;  %s17_s18 = sshll.u32 %s1686_s17, 4  ;;  %s31_s16 = int_to_ptr.vmem [resolvable:$true] %s30_s16  ;;  %s18_s18 = int_to_ptr.vmem [resolvable:$true] %s17_s18 }
   0x4   :  { %s1607_s19 = scalar_lea.vmem %s31_s16, 32  ;;  %p1612_p1 = scmp.lt.s32.totalorder %s31_s16, %s31_s16 }
   0x5   :  { %p1608_p0 = scmp.ne.s32.totalorder %s31_s16, %s1607_s19  ;;  %p1613_p2 = scmp.lt.s32.totalorder %s1607_s19, %s1607_s19 }
   0x7   :  { %p1614_p3 = por %p1613_p2, %p1612_p1 }
   0x9   :  { %p1615_p4 = pnand %p1614_p3, %p1608_p0 }
   0xb   :  { %1618 = shalt.err (!%p1615_p4)
}
   0xc   :  { %33 = dma.hbm_to_vmem [thread:$0]  %s1991_s1, 32, %s31_s16, [#allocation6]  }
   0xd   :  { %s1627_s22 = scalar_lea.vmem %s18_s18, 1024  ;;  %p1632_p6 = scmp.lt.s32.totalorder %s18_s18, %s18_s18 }
   0xe   :  { %p1628_p5 = scmp.ne.s32.totalorder %s18_s18, %s1627_s22  ;;  %p1633_p7 = scmp.lt.s32.totalorder %s1627_s22, %s1627_s22 }
  0x10   :  { %p1634_p8 = por %p1633_p7, %p1632_p6 }
  0x12   :  { %p1635_p9 = pnand %p1634_p8, %p1628_p5 }
  0x14   :  { %1638 = shalt.err (!%p1635_p9)
}
  0x15   :  { %s1687_s23 = smov 128   ;;  %s1688_s24 = smov 8  }
  0x16   :  { %23 = dma.hbm_to_vmem [thread:$0]  %s1990_s0, 1024, %s18_s18, [#allocation3], %s1687_s23, %s1687_s23, %s1688_s24  }
  0x17   :  { %s1689_s27 = smov [#allocation7]  }
  0x18   :  { %s41_s28 = sshll.u32 %s1689_s27, 4  ;;  %s42_s28 = int_to_ptr.vmem [resolvable:$true] %s41_s28 }
  0x19   :  { %s1647_s29 = scalar_lea.vmem %s42_s28, 12288  ;;  %p1652_p11 = scmp.lt.s32.totalorder %s42_s28, %s42_s28 }
  0x1a   :  { %p1648_p10 = scmp.ne.s32.totalorder %s42_s28, %s1647_s29  ;;  %p1653_p12 = scmp.lt.s32.totalorder %s1647_s29, %s1647_s29 }
  0x1c   :  { %p1654_p13 = por %p1653_p12, %p1652_p11 }
  0x1e   :  { %p1655_p0 = pnand %p1654_p13, %p1648_p10 }
  0x20   :  { %1658 = shalt.err (!%p1655_p0)
}
  0x21   :  { %s1690_s1 = smov 384   ;;  %s1691_s30 = smov 24  }
  0x22   :  { %47 = dma.hbm_to_vmem [thread:$0]  %s1993_s3, 12288, %s42_s28, [#allocation6], %s1690_s1, %s1690_s1, %s1691_s30  }
  0x23   :  { %1679 = dma.done.wait [#allocation3], 1024  }
  0x24   :  { %1680 = vsyncadd [#allocation3], 4294966272 }
  0x25   :  { %1681 = dma.done.wait [#allocation6], 12320  }
  0x26   :  { %1682 = vsyncadd [#allocation6], 4294954976  ;;  %v1730_v0 = vld [vmem:[#allocation2] sm:$0xff]  ;;  %v1732_v1 = vld [vmem:[#allocation2 + $0x10] sm:$0xff] }
  0x27   :  { %v1734_v2 = vld [vmem:[#allocation2 + $0x8] sm:$0xff]  ;;  %v65_v3 = vunpack.c.l.bf16 %v1730_v0  ;;  %v66_v4 = vunpack.c.h.bf16 %v1730_v0  ;;  %v69_v5 = vunpack.c.l.bf16 %v1732_v1  ;;  %v70_v6 = vunpack.c.h.bf16 %v1732_v1  ;;  %v1740_v7 = vld [vmem:[#allocation2 + $0x18] sm:$0xff]  ;;  %v1742_v8 = vld [vmem:[#allocation2 + $0x20] sm:$0xff] }
  0x28   :  { %v67_v9 = vunpack.c.l.bf16 %v1734_v2  ;;  %v68_v10 = vunpack.c.h.bf16 %v1734_v2  ;;  %v71_v11 = vunpack.c.l.bf16 %v1740_v7  ;;  %v72_v12 = vunpack.c.h.bf16 %v1740_v7  ;;  %v1748_v13 = vld [vmem:[#allocation2 + $0x28] sm:$0xff]  ;;  %v1758_v16 = vld [vmem:[#allocation2 + $0x30] sm:$0xff]  ;;  %v1762_v19 = vld [vmem:[#allocation2 + $0x38] sm:$0xff] }
  0x29   :  { %v83_v14 = vadd.f32 %v66_v4, %v65_v3  ;;  %v89_v15 = vadd.f32 %v70_v6, %v69_v5  ;;  %v73_v17 = vunpack.c.l.bf16 %v1742_v8  ;;  %v74_v18 = vunpack.c.h.bf16 %v1742_v8  ;;  %v1439_v32 = vld [vmem:[#allocation7 + $0x154] ss:$24 sps:$4 sm:$0xff]   ;;  %v1443_v34 = vld [vmem:[#allocation7 + $0x150] ss:$24 sps:$4 sm:$0xff]   ;;  %v1445_v36 = vld [vmem:[#allocation7 + $0x124] ss:$24 sps:$4 sm:$0xff]  }
  0x2a   :  { %v86_v20 = vadd.f32 %v68_v10, %v67_v9  ;;  %v92_v21 = vadd.f32 %v72_v12, %v71_v11  ;;  %v75_v22 = vunpack.c.l.bf16 %v1748_v13  ;;  %v76_v23 = vunpack.c.h.bf16 %v1748_v13  ;;  %v1441_v33 = vld [vmem:[#allocation7 + $0x15c] ss:$24 sps:$4 sm:$0xff]   ;;  %v1444_v35 = vld [vmem:[#allocation7 + $0x158] ss:$24 sps:$4 sm:$0xff]   ;;  %v1447_v37 = vld [vmem:[#allocation7 + $0x12c] ss:$24 sps:$4 sm:$0xff]   ;;  %850 = vmatprep.subr.bf16.mxu0 %v1439_v32 }
  0x2b   :  { %84 = vadd.xlane.f32.xlu0 %v83_v14  ;;  %90 = vadd.xlane.f32.xlu1 %v89_v15  ;;  %v95_v24 = vadd.f32 %v74_v18, %v73_v17  ;;  %v77_v25 = vunpack.c.l.bf16 %v1758_v16  ;;  %v78_v27 = vunpack.c.h.bf16 %v1758_v16  ;;  %v79_v28 = vunpack.c.l.bf16 %v1762_v19  ;;  %v1449_v38 = vld [vmem:[#allocation7 + $0x120] ss:$24 sps:$4 sm:$0xff]   ;;  %v1451_v40 = vld [vmem:[#allocation7 + $0xf4] ss:$24 sps:$4 sm:$0xff]   ;;  %v1455_v42 = vld [vmem:[#allocation7 + $0xf0] ss:$24 sps:$4 sm:$0xff]  }
  0x2c   :  { %v98_v26 = vadd.f32 %v76_v23, %v75_v22  ;;  %v80_v29 = vunpack.c.h.bf16 %v1762_v19  ;;  %923 = vmatprep.subr.bf16.mxu1 %v1441_v33  ;;  %851 = vmatpush1.bf16.msra.mxu0 %v1443_v34  ;;  %v1450_v39 = vld [vmem:[#allocation7 + $0x128] ss:$24 sps:$4 sm:$0xff]   ;;  %v1453_v41 = vld [vmem:[#allocation7 + $0xfc] ss:$24 sps:$4 sm:$0xff]   ;;  %v1456_v43 = vld [vmem:[#allocation7 + $0xf8] ss:$24 sps:$4 sm:$0xff]  }
  0x2d   :  { %v101_v30 = vadd.f32 %v78_v27, %v77_v25  ;;  %924 = vmatpush1.bf16.msra.mxu1 %v1444_v35  ;;  %852 = vmatprep.subr.bf16.mxu0 %v1445_v36  ;;  %v1457_v44 = vld [vmem:[#allocation7 + $0xc4] ss:$24 sps:$4 sm:$0xff]   ;;  %v1461_v46 = vld [vmem:[#allocation7 + $0xc0] ss:$24 sps:$4 sm:$0xff]   ;;  %v1463_v48 = vld [vmem:[#allocation7 + $0x94] ss:$24 sps:$4 sm:$0xff]  }
  0x2e   :  { %v104_v31 = vadd.f32 %v80_v29, %v79_v28  ;;  %925 = vmatprep.subr.bf16.mxu1 %v1447_v37  ;;  %v1459_v45 = vld [vmem:[#allocation7 + $0xcc] ss:$24 sps:$4 sm:$0xff]   ;;  %v1462_v47 = vld [vmem:[#allocation7 + $0xc8] ss:$24 sps:$4 sm:$0xff]   ;;  %v1465_v49 = vld [vmem:[#allocation7 + $0x9c] ss:$24 sps:$4 sm:$0xff]  }
  0x2f   :  { %87 = vadd.xlane.f32.xlu0 %v86_v20  ;;  %93 = vadd.xlane.f32.xlu1 %v92_v21  ;;  %v1467_v50 = vld [vmem:[#allocation7 + $0x90] ss:$24 sps:$4 sm:$0xff]   ;;  %v1469_v52 = vld [vmem:[#allocation7 + $0x64] ss:$24 sps:$4 sm:$0xff]   ;;  %v1473_v54 = vld [vmem:[#allocation7 + $0x60] ss:$24 sps:$4 sm:$0xff]  }
  0x30   :  { %853 = vmatpush1.bf16.msra.mxu0 %v1449_v38  ;;  %v1468_v51 = vld [vmem:[#allocation7 + $0x98] ss:$24 sps:$4 sm:$0xff]   ;;  %v1471_v53 = vld [vmem:[#allocation7 + $0x6c] ss:$24 sps:$4 sm:$0xff]   ;;  %v1474_v55 = vld [vmem:[#allocation7 + $0x68] ss:$24 sps:$4 sm:$0xff]  }
  0x31   :  { %926 = vmatpush1.bf16.msra.mxu1 %v1450_v39  ;;  %854 = vmatprep.subr.bf16.mxu0 %v1451_v40  ;;  %v1475_v56 = vld [vmem:[#allocation7 + $0x34] ss:$24 sps:$4 sm:$0xff]   ;;  %v1479_v58 = vld [vmem:[#allocation7 + $0x30] ss:$24 sps:$4 sm:$0xff]   ;;  %v1481_v60 = vld [vmem:[#allocation7 + $0x4] ss:$24 sps:$4 sm:$0xff]  }
  0x32   :  { %927 = vmatprep.subr.bf16.mxu1 %v1453_v41  ;;  %v1477_v57 = vld [vmem:[#allocation7 + $0x3c] ss:$24 sps:$4 sm:$0xff]   ;;  %v1480_v59 = vld [vmem:[#allocation7 + $0x38] ss:$24 sps:$4 sm:$0xff]   ;;  %v1483_v61 = vld [vmem:[#allocation7 + $0xc] ss:$24 sps:$4 sm:$0xff]  }
  0x33   :  { %96 = vadd.xlane.f32.xlu0 %v95_v24  ;;  %99 = vadd.xlane.f32.xlu1 %v98_v26  ;;  %v1485_v62 = vld [vmem:[#allocation7] ss:$24 sps:$4 sm:$0xff]   ;;  %v1487_v14 = vld [vmem:[#allocation7 + $0x2d4] ss:$24 sps:$4 sm:$0xff]   ;;  %v1491_v20 = vld [vmem:[#allocation7 + $0x2d0] ss:$24 sps:$4 sm:$0xff]  }
  0x34   :  { %855 = vmatpush1.bf16.msra.mxu0 %v1455_v42  ;;  %v1486_v63 = vld [vmem:[#allocation7 + $0x8] ss:$24 sps:$4 sm:$0xff]   ;;  %v1489_v15 = vld [vmem:[#allocation7 + $0x2dc] ss:$24 sps:$4 sm:$0xff]   ;;  %v1492_v21 = vld [vmem:[#allocation7 + $0x2d8] ss:$24 sps:$4 sm:$0xff]  }
  0x35   :  { %928 = vmatpush1.bf16.msra.mxu1 %v1456_v43  ;;  %856 = vmatprep.subr.bf16.mxu0 %v1457_v44  ;;  %v1493_v19 = vld [vmem:[#allocation7 + $0x2a4] ss:$24 sps:$4 sm:$0xff]  }
  0x36   :  { %929 = vmatprep.subr.bf16.mxu1 %v1459_v45 }
  0x37   :  { %102 = vadd.xlane.f32.xlu0 %v101_v30  ;;  %105 = vadd.xlane.f32.xlu1 %v104_v31 }
  0x38   :  { %857 = vmatpush1.bf16.msra.mxu0 %v1461_v46 }
  0x39   :  { %930 = vmatpush1.bf16.msra.mxu1 %v1462_v47  ;;  %858 = vmatprep.subr.bf16.mxu0 %v1463_v48 }
  0x3a   :  { %931 = vmatprep.subr.bf16.mxu1 %v1465_v49 }
  0x3c   :  { %859 = vmatpush1.bf16.msra.mxu0 %v1467_v50 }
  0x3d   :  { %932 = vmatpush1.bf16.msra.mxu1 %v1468_v51  ;;  %860 = vmatprep.subr.bf16.mxu0 %v1469_v52 }
  0x3e   :  { %933 = vmatprep.subr.bf16.mxu1 %v1471_v53 }
  0x40   :  { %861 = vmatpush1.bf16.msra.mxu0 %v1473_v54 }
  0x41   :  { %934 = vmatpush1.bf16.msra.mxu1 %v1474_v55  ;;  %862 = vmatprep.subr.bf16.mxu0 %v1475_v56 }
  0x42   :  { %935 = vmatprep.subr.bf16.mxu1 %v1477_v57 }
  0x44   :  { %863 = vmatpush1.bf16.msra.mxu0 %v1479_v58 }
  0x45   :  { %936 = vmatpush1.bf16.msra.mxu1 %v1480_v59  ;;  %864 = vmatprep.subr.bf16.mxu0 %v1481_v60 }
  0x46   :  { %937 = vmatprep.subr.bf16.mxu1 %v1483_v61  ;;  %v1497_v61 = vld [vmem:[#allocation7 + $0x2a0] ss:$24 sps:$4 sm:$0xff]  }
  0x48   :  { %865 = vmatpush1.bf16.msra.mxu0 %v1485_v62  ;;  %v1498_v62 = vld [vmem:[#allocation7 + $0x2a8] ss:$24 sps:$4 sm:$0xff]  }
  0x49   :  { %938 = vmatpush1.bf16.msra.mxu1 %v1486_v63  ;;  %866 = vmatprep.subr.bf16.mxu0 %v1487_v14  ;;  %v1499_v14 = vld [vmem:[#allocation7 + $0x274] ss:$24 sps:$4 sm:$0xff]  }
  0x4a   :  { %939 = vmatprep.subr.bf16.mxu1 %v1489_v15  ;;  %v1501_v15 = vld [vmem:[#allocation7 + $0x27c] ss:$24 sps:$4 sm:$0xff]  }
  0x4c   :  { %867 = vmatpush2.bf16.msra.mxu0 %v1491_v20  ;;  %v1503_v20 = vld [vmem:[#allocation7 + $0x270] ss:$24 sps:$4 sm:$0xff]  }
  0x4d   :  { %940 = vmatpush2.bf16.msra.mxu1 %v1492_v21  ;;  %868 = vmatprep.subr.bf16.mxu0 %v1493_v19  ;;  %v1504_v21 = vld [vmem:[#allocation7 + $0x278] ss:$24 sps:$4 sm:$0xff]  }
  0x50   :  { %869 = vmatpush2.bf16.msra.mxu0 %v1497_v61 }
  0x51   :  { %870 = vmatprep.subr.bf16.mxu0 %v1499_v14 }
  0x54   :  { %871 = vmatpush2.bf16.msra.mxu0 %v1503_v20 }
  0xb4   :  { %v85_v24 = vpop.xlane.xlu0 %84  ;;  %v91_v26 = vpop.xlane.xlu1 %90 }
  0xb5   :  { %v108_v30 = vmul.f32 0.00390625, %v85_v24  ;;  %v110_v31 = vmul.f32 0.00390625, %v91_v26  ;;  %v1505_v24 = vld [vmem:[#allocation7 + $0x244] ss:$24 sps:$4 sm:$0xff]  }
  0xb6   :  { %v1507_v26 = vld [vmem:[#allocation7 + $0x24c] ss:$24 sps:$4 sm:$0xff]   ;;  %872 = vmatprep.subr.bf16.mxu0 %v1505_v24 }
  0xb7   :  { %v1796_v32 = vsub.f32 %v65_v3, %v108_v30  ;;  %v1800_v33 = vsub.f32 %v66_v4, %v108_v30  ;;  %v1804_v34 = vsub.f32 %v69_v5, %v110_v31  ;;  %v1808_v35 = vsub.f32 %v70_v6, %v110_v31  ;;  %v1509_v30 = vld [vmem:[#allocation7 + $0x240] ss:$24 sps:$4 sm:$0xff]  }
  0xb8   :  { %v88_v36 = vpop.xlane.xlu0 %87  ;;  %v94_v37 = vpop.xlane.xlu1 %93  ;;  %v1510_v31 = vld [vmem:[#allocation7 + $0x248] ss:$24 sps:$4 sm:$0xff]   ;;  %873 = vmatpush2.bf16.msra.mxu0 %v1509_v30  ;;  %v82_v30 = vld [vmem:[%s1992_s2] sm:$0x3]  ;;  %s1692_s2 = smov [#allocation8]  }
  0xb9   :  { %v109_v38 = vmul.f32 0.00390625, %v88_v36  ;;  %v111_v39 = vmul.f32 0.00390625, %v94_v37  ;;  %v132_v3 = vmul.f32 %v1796_v32, %v1796_v32  ;;  %v133_v0 = vmul.f32 %v1800_v33, %v1800_v33  ;;  %v1511_v36 = vld [vmem:[#allocation7 + $0x214] ss:$24 sps:$4 sm:$0xff]   ;;  %s1242_s7 = sshll.u32 %s1692_s2, 4  ;;  %s1243_s7 = int_to_ptr.vmem [resolvable:$true] %s1242_s7 }
  0xba   :  { %v136_v4 = vmul.f32 %v1804_v34, %v1804_v34  ;;  %v137_v5 = vmul.f32 %v1808_v35, %v1808_v35  ;;  %v1513_v37 = vld [vmem:[#allocation7 + $0x21c] ss:$24 sps:$4 sm:$0xff]   ;;  %874 = vmatprep.subr.bf16.mxu0 %v1511_v36  ;;  %s1659_s8 = scalar_lea.vmem %s1243_s7, 3072  ;;  %p1664_p2 = scmp.lt.s32.totalorder %s1243_s7, %s1243_s7 }
  0xbb   :  { %v1820_v1 = vsub.f32 %v67_v9, %v109_v38  ;;  %v1824_v6 = vsub.f32 %v68_v10, %v109_v38  ;;  %v1828_v40 = vsub.f32 %v71_v11, %v111_v39  ;;  %v1832_v41 = vsub.f32 %v72_v12, %v111_v39  ;;  %v1515_v38 = vld [vmem:[#allocation7 + $0x210] ss:$24 sps:$4 sm:$0xff]   ;;  %p1660_p1 = scmp.ne.s32.totalorder %s1243_s7, %s1659_s8  ;;  %p1665_p3 = scmp.lt.s32.totalorder %s1659_s8, %s1659_s8 }
  0xbc   :  { %v97_v42 = vpop.xlane.xlu0 %96  ;;  %v148_v43 = vadd.f32 %v133_v0, %v132_v3  ;;  %v100_v44 = vpop.xlane.xlu1 %99  ;;  %v154_v10 = vadd.f32 %v137_v5, %v136_v4  ;;  %v1516_v39 = vld [vmem:[#allocation7 + $0x218] ss:$24 sps:$4 sm:$0xff]   ;;  %875 = vmatpush2.bf16.msra.mxu0 %v1515_v38  ;;  %v1517_v3 = vld [vmem:[#allocation7 + $0x1e4] ss:$24 sps:$4 sm:$0xff]   ;;  %v1522_v5 = vld [vmem:[#allocation7 + $0x1e8] ss:$24 sps:$4 sm:$0xff]  }
  0xbd   :  { %v112_v45 = vmul.f32 0.00390625, %v97_v42  ;;  %v113_v46 = vmul.f32 0.00390625, %v100_v44  ;;  %v134_v9 = vmul.f32 %v1820_v1, %v1820_v1  ;;  %v135_v2 = vmul.f32 %v1824_v6, %v1824_v6  ;;  %v1519_v0 = vld [vmem:[#allocation7 + $0x1ec] ss:$24 sps:$4 sm:$0xff]   ;;  %v1521_v4 = vld [vmem:[#allocation7 + $0x1e0] ss:$24 sps:$4 sm:$0xff]   ;;  %876 = vmatprep.subr.bf16.mxu0 %v1517_v3  ;;  %p1666_p4 = por %p1665_p3, %p1664_p2 }
  0xbe   :  { %149 = vadd.xlane.f32.xlu0 %v148_v43  ;;  %v138_v11 = vmul.f32 %v1828_v40, %v1828_v40  ;;  %v139_v7 = vmul.f32 %v1832_v41, %v1832_v41  ;;  %v1523_v42 = vld [vmem:[#allocation7 + $0x1b4] ss:$24 sps:$4 sm:$0xff]   ;;  %v1527_v44 = vld [vmem:[#allocation7 + $0x1b0] ss:$24 sps:$4 sm:$0xff]  }
  0xbf   :  { %v1844_v12 = vsub.f32 %v73_v17, %v112_v45  ;;  %v1848_v47 = vsub.f32 %v74_v18, %v112_v45  ;;  %v1852_v48 = vsub.f32 %v75_v22, %v113_v46  ;;  %v1856_v49 = vsub.f32 %v76_v23, %v113_v46  ;;  %v1525_v43 = vld [vmem:[#allocation7 + $0x1bc] ss:$24 sps:$4 sm:$0xff]   ;;  %v1528_v45 = vld [vmem:[#allocation7 + $0x1b8] ss:$24 sps:$4 sm:$0xff]   ;;  %p1667_p5 = pnand %p1666_p4, %p1660_p1 }
  0xc0   :  { %v103_v50 = vpop.xlane.xlu0 %102  ;;  %v151_v51 = vadd.f32 %v135_v2, %v134_v9  ;;  %v106_v52 = vpop.xlane.xlu1 %105  ;;  %v157_v18 = vadd.f32 %v139_v7, %v138_v11  ;;  %877 = vmatpush2.bf16.msra.mxu0 %v1521_v4  ;;  %v1529_v46 = vld [vmem:[#allocation7 + $0x184] ss:$24 sps:$4 sm:$0xff]   ;;  %v1533_v2 = vld [vmem:[#allocation7 + $0x180] ss:$24 sps:$4 sm:$0xff]  }
  0xc1   :  { %v114_v53 = vmul.f32 0.00390625, %v103_v50  ;;  %v115_v54 = vmul.f32 0.00390625, %v106_v52  ;;  %v140_v17 = vmul.f32 %v1844_v12, %v1844_v12  ;;  %v141_v8 = vmul.f32 %v1848_v47, %v1848_v47  ;;  %v1531_v9 = vld [vmem:[#allocation7 + $0x18c] ss:$24 sps:$4 sm:$0xff]   ;;  %878 = vmatprep.subr.bf16.mxu0 %v1523_v42 }
  0xc2   :  { %155 = vadd.xlane.f32.xlu0 %v154_v10  ;;  %152 = vadd.xlane.f32.xlu1 %v151_v51  ;;  %v142_v22 = vmul.f32 %v1852_v48, %v1852_v48  ;;  %v143_v13 = vmul.f32 %v1856_v49, %v1856_v49  ;;  %v1534_v10 = vld [vmem:[#allocation7 + $0x188] ss:$24 sps:$4 sm:$0xff]   ;;  %v1537_v11 = vld [vmem:[#allocation7 + $0x164] ss:$24 sps:$4 sm:$0xff]  }
  0xc3   :  { %v1868_v23 = vsub.f32 %v77_v25, %v114_v53  ;;  %v1872_v55 = vsub.f32 %v78_v27, %v114_v53  ;;  %v1876_v56 = vsub.f32 %v79_v28, %v115_v54  ;;  %v1880_v57 = vsub.f32 %v80_v29, %v115_v54  ;;  %v1495_v29 = vld [vmem:[#allocation7 + $0x2ac] ss:$24 sps:$4 sm:$0xff]  }
  0xc4   :  { %v160_v58 = vadd.f32 %v141_v8, %v140_v17  ;;  %v163_v16 = vadd.f32 %v143_v13, %v142_v22  ;;  %941 = vmatprep.subr.bf16.mxu1 %v1495_v29  ;;  %879 = vmatpush2.bf16.msra.mxu0 %v1527_v44  ;;  %v213_v8 = vlaneseq }
  0xc5   :  { %v144_v59 = vmul.f32 %v1868_v23, %v1868_v23  ;;  %v145_v25 = vmul.f32 %v1872_v55, %v1872_v55  ;;  %v146_v27 = vmul.f32 %v1876_v56, %v1876_v56  ;;  %v147_v28 = vmul.f32 %v1880_v57, %v1880_v57  ;;  %942 = vmatpush2.bf16.msra.mxu1 %v1498_v62 }
  0xc6   :  { %158 = vadd.xlane.f32.xlu1 %v157_v18  ;;  %161 = vadd.xlane.f32.xlu0 %v160_v58 }
  0xc7   :  { %v166_v60 = vadd.f32 %v145_v25, %v144_v59  ;;  %v169_v63 = vadd.f32 %v147_v28, %v146_v27  ;;  %943 = vmatprep.subr.bf16.mxu1 %v1501_v15  ;;  %880 = vmatprep.subr.bf16.mxu0 %v1529_v46  ;;  %v81_v15 = vld [vmem:[#allocation5] sm:$0x3] }
  0xc8   :  { %881 = vmatpush2.bf16.msra.mxu0 %v1533_v2 }
  0xc9   :  { %944 = vmatpush2.bf16.msra.mxu1 %v1504_v21  ;;  %996 = vmatprep.subr.bf16.mxu0 %v1537_v11 }
  0xca   :  { %164 = vadd.xlane.f32.xlu1 %v163_v16  ;;  %167 = vadd.xlane.f32.xlu0 %v166_v60  ;;  %v214_v16 = vshrl.u32 %v213_v8, 7 }
  0xcb   :  { %945 = vmatprep.subr.bf16.mxu1 %v1507_v26 }
  0xcc   :  { %v219_v62 = vsub.s32 1, %v214_v16 }
  0xcd   :  { %946 = vmatpush2.bf16.msra.mxu1 %v1510_v31 }
  0xce   :  { %170 = vadd.xlane.f32.xlu1 %v169_v63  ;;  %947 = vmatprep.subr.bf16.mxu1 %v1513_v37  ;;  %v215_v63 = vsub.s32 0, %v214_v16  ;;  %v1893_v31 = vrot.slane %v81_v15, %v219_v62  ;;  %v1899_v3 = vrot.slane %v82_v30, %v219_v62 }
  0xd0   :  { %v1895_v36 = vrot.slane %v81_v15, %v215_v63  ;;  %v1903_v42 = vrot.slane %v82_v30, %v215_v63  ;;  %v1544_v30 = vld [vmem:[#allocation7 + $0xd0] ss:$24 sps:$4 sm:$0xff]  }
  0xd1   :  { %948 = vmatpush2.bf16.msra.mxu1 %v1516_v39 }
  0xd2   :  { %949 = vmatprep.subr.bf16.mxu1 %v1519_v0 }
  0xd5   :  { %950 = vmatpush2.bf16.msra.mxu1 %v1522_v5 }
  0xd6   :  { %951 = vmatprep.subr.bf16.mxu1 %v1525_v43 }
  0xd9   :  { %952 = vmatpush2.bf16.msra.mxu1 %v1528_v45 }
  0xda   :  { %953 = vmatprep.subr.bf16.mxu1 %v1531_v9 }
  0xdd   :  { %954 = vmatpush2.bf16.msra.mxu1 %v1534_v10 }
  0xde   :  { %1399 = vmatprep.subr.bf16.mxu1 %v1537_v11 }
 0x147   :  { %v150_v7 = vpop.xlane.xlu0 %149 }
 0x148   :  { %v172_v50 = vmul.f32 0.00390625, %v150_v7 }
 0x14a   :  { %v180_v51 = vadd.f32 1e-05, %v172_v50 }
 0x14b   :  { %v153_v52 = vpop.xlane.xlu1 %152  ;;  %v156_v53 = vpop.xlane.xlu0 %155 }
 0x14c   :  { %1583 = vrsqrt.f32 %v180_v51  ;;  %v173_v54 = vmul.f32 0.00390625, %v153_v52  ;;  %v174_v17 = vmul.f32 0.00390625, %v156_v53  ;;  %v1535_v53 = vld [vmem:[#allocation7 + $0x160] ss:$24 sps:$4 sm:$0xff]  }
 0x14e   :  { %v181_v18 = vadd.f32 1e-05, %v173_v54  ;;  %v182_v22 = vadd.f32 1e-05, %v174_v17 }
 0x14f   :  { %v159_v13 = vpop.xlane.xlu1 %158  ;;  %v162_v58 = vpop.xlane.xlu0 %161 }
 0x150   :  { %1585 = vrsqrt.f32 %v181_v18  ;;  %v175_v59 = vmul.f32 0.00390625, %v159_v13  ;;  %v176_v25 = vmul.f32 0.00390625, %v162_v58 }
 0x151   :  { %1587 = vrsqrt.f32 %v182_v22  ;;  %v1540_v22 = vld [vmem:[#allocation7 + $0x134] ss:$24 sps:$4 sm:$0xff]  }
 0x152   :  { %v183_v27 = vadd.f32 1e-05, %v175_v59  ;;  %v184_v28 = vadd.f32 1e-05, %v176_v25  ;;  %v1538_v59 = vld [vmem:[#allocation7 + $0x130] ss:$24 sps:$4 sm:$0xff]  }
 0x153   :  { %v165_v60 = vpop.xlane.xlu1 %164  ;;  %v168_v19 = vpop.xlane.xlu0 %167 }
 0x154   :  { %1589 = vrsqrt.f32 %v183_v27  ;;  %v177_v29 = vmul.f32 0.00390625, %v165_v60  ;;  %v178_v61 = vmul.f32 0.00390625, %v168_v19 }
 0x155   :  { %1591 = vrsqrt.f32 %v184_v28  ;;  %v1543_v28 = vld [vmem:[#allocation7 + $0x104] ss:$24 sps:$4 sm:$0xff]  }
 0x156   :  { %v185_v14 = vadd.f32 1e-05, %v177_v29  ;;  %v186_v26 = vadd.f32 1e-05, %v178_v61 }
 0x157   :  { %v171_v20 = vpop.xlane.xlu1 %170 }
 0x158   :  { %1593 = vrsqrt.f32 %v185_v14  ;;  %v179_v21 = vmul.f32 0.00390625, %v171_v20  ;;  %v1541_v14 = vld [vmem:[#allocation7 + $0x100] ss:$24 sps:$4 sm:$0xff]  }
 0x159   :  { %v1584_v24 = vpop.eup %1583 }
 0x15a   :  { %v187_v37 = vadd.f32 1e-05, %v179_v21  ;;  %v197_v38 = vmul.f32 %v1584_v24, %v1800_v33  ;;  %v196_v39 = vmul.f32 %v1584_v24, %v1796_v32  ;;  %v1546_v24 = vld [vmem:[#allocation7 + $0xd4] ss:$24 sps:$4 sm:$0xff]  }
 0x15c   :  { %1595 = vrsqrt.f32 %v187_v37  ;;  %v224_v4 = vmul.f32 %v1893_v31, %v197_v38  ;;  %v223_v5 = vmul.f32 %v1895_v36, %v196_v39  ;;  %v1549_v37 = vld [vmem:[#allocation7 + $0xa4] ss:$24 sps:$4 sm:$0xff]  }
 0x15d   :  { %v1586_v0 = vpop.eup %1585  ;;  %1597 = vrsqrt.f32 %v186_v26 }
 0x15e   :  { %v1588_v43 = vpop.eup %1587  ;;  %v199_v44 = vmul.f32 %v1586_v0, %v1824_v6  ;;  %v198_v45 = vmul.f32 %v1586_v0, %v1820_v1  ;;  %v251_v2 = vadd.f32 %v1899_v3, %v224_v4  ;;  %v250_v10 = vadd.f32 %v1903_v42, %v223_v5 }
 0x15f   :  { %v201_v33 = vmul.f32 %v1588_v43, %v1808_v35  ;;  %v200_v51 = vmul.f32 %v1588_v43, %v1804_v34  ;;  %v1547_v43 = vld [vmem:[#allocation7 + $0xa0] ss:$24 sps:$4 sm:$0xff]  }
 0x160   :  { %v226_v32 = vmul.f32 %v1893_v31, %v199_v44  ;;  %v225_v46 = vmul.f32 %v1895_v36, %v198_v45 }
 0x161   :  { %v1590_v9 = vpop.eup %1589  ;;  %v228_v11 = vmul.f32 %v1893_v31, %v201_v33 }
 0x162   :  { %v1592_v7 = vpop.eup %1591  ;;  %v253_v50 = vadd.f32 %v1899_v3, %v226_v32  ;;  %v252_v6 = vadd.f32 %v1903_v42, %v225_v46  ;;  %v203_v1 = vmul.f32 %v1590_v9, %v1832_v41  ;;  %v202_v35 = vmul.f32 %v1590_v9, %v1828_v40  ;;  %v1550_v32 = vld [vmem:[#allocation7 + $0x70] ss:$24 sps:$4 sm:$0xff]   ;;  %v1555_v46 = vld [vmem:[#allocation7 + $0x44] ss:$24 sps:$4 sm:$0xff]  }
 0x163   :  { %v205_v8 = vmul.f32 %v1592_v7, %v1848_v47  ;;  %v255_v40 = vadd.f32 %v1899_v3, %v228_v11  ;;  %v227_v47 = vmul.f32 %v1895_v36, %v200_v51  ;;  %v204_v62 = vmul.f32 %v1592_v7, %v1844_v12  ;;  %v1556_v11 = vld [vmem:[#allocation7 + $0x10] ss:$24 sps:$4 sm:$0xff]   ;;  %v1561_v7 = vld [vmem:[#allocation7 + $0x2e4] ss:$24 sps:$4 sm:$0xff]   ;;  %v1570_v51 = vld [vmem:[#allocation7 + $0x254] ss:$24 sps:$4 sm:$0xff]  }
 0x164   :  { %v1918_v52 = vpack.c.bf16 %v253_v50, %v251_v2  ;;  %v1920_v54 = vpack.c.bf16 %v252_v6, %v250_v10  ;;  %v230_v17 = vmul.f32 %v1893_v31, %v203_v1  ;;  %v229_v13 = vmul.f32 %v1895_v36, %v202_v35  ;;  %v1553_v2 = vld [vmem:[#allocation7 + $0x40] ss:$24 sps:$4 sm:$0xff]   ;;  %v1558_v10 = vld [vmem:[#allocation7 + $0x14] ss:$24 sps:$4 sm:$0xff]   ;;  %v1562_v6 = vld [vmem:[#allocation7 + $0x2b0] ss:$24 sps:$4 sm:$0xff]  }
 0x165   :  { %v1594_v18 = vpop.eup %1593  ;;  %v232_v25 = vmul.f32 %v1893_v31, %v205_v8  ;;  %v254_v29 = vadd.f32 %v1903_v42, %v227_v47  ;;  %v1564_v50 = vld [vmem:[#allocation7 + $0x2b4] ss:$24 sps:$4 sm:$0xff]   ;;  %v1567_v1 = vld [vmem:[#allocation7 + $0x284] ss:$24 sps:$4 sm:$0xff]   ;;  %v1565_v35 = vld [vmem:[#allocation7 + $0x280] ss:$24 sps:$4 sm:$0xff]  }
 0x166   :  { %882 = vmatprep.mubr.bf16.mxu0 %v1918_v52  ;;  %955 = vmatprep.mubr.bf16.mxu1 %v1918_v52  ;;  %v257_v34 = vadd.f32 %v1899_v3, %v230_v17  ;;  %v207_v41 = vmul.f32 %v1594_v18, %v1856_v49  ;;  %v256_v49 = vadd.f32 %v1903_v42, %v229_v13  ;;  %v1571_v17 = vld [vmem:[#allocation7 + $0x220] ss:$24 sps:$4 sm:$0xff]   ;;  %v1576_v8 = vld [vmem:[#allocation7 + $0x1f4] ss:$24 sps:$4 sm:$0xff]  }
 0x167   :  { %883 = vmatmul.mubr.bf16.vlgmr.msra.gmra.mxu0 %v1920_v54  ;;  %956 = vmatmul.mubr.bf16.vlgmr.msra.gmra.mxu1 %v1920_v54  ;;  %v206_v60 = vmul.f32 %v1594_v18, %v1852_v48  ;;  %v259_v15 = vadd.f32 %v1899_v3, %v232_v25  ;;  %v1574_v18 = vld [vmem:[#allocation7 + $0x1f0] ss:$24 sps:$4 sm:$0xff]   ;;  %v1577_v13 = vld [vmem:[#allocation7 + $0x1c0] ss:$24 sps:$4 sm:$0xff]  }
 0x168   :  { %997 = vmatpush1.bf16.msra.mxu0 %v1535_v53  ;;  %1415 = vmatpush1.bf16.msra.mxu1 %v1535_v53  ;;  %v1933_v58 = vpack.c.bf16 %v257_v34, %v255_v40  ;;  %v234_v16 = vmul.f32 %v1893_v31, %v207_v41  ;;  %v1946_v48 = vpack.c.bf16 %v256_v49, %v254_v29  ;;  %v1573_v53 = vld [vmem:[#allocation7 + $0x224] ss:$24 sps:$4 sm:$0xff]   ;;  %v1582_v40 = vld [vmem:[#allocation7 + $0x194] ss:$24 sps:$4 sm:$0xff]   ;;  %v1580_v34 = vld [vmem:[#allocation7 + $0x190] ss:$24 sps:$4 sm:$0xff]  }
 0x169   :  { %v1596_v27 = vpop.eup %1595  ;;  %998 = vmatprep.subr.bf16.mxu0 %v1540_v22  ;;  %1400 = vmatprep.subr.bf16.mxu1 %v1540_v22  ;;  %v233_v20 = vmul.f32 %v1895_v36, %v206_v60  ;;  %v1579_v22 = vld [vmem:[#allocation7 + $0x1c4] ss:$24 sps:$4 sm:$0xff]  }
 0x16a   :  { %v1598_v19 = vpop.eup %1597  ;;  %892 = vmatprep.mubr.bf16.mxu0 %v1933_v58  ;;  %965 = vmatprep.mubr.bf16.mxu1 %v1933_v58  ;;  %v261_v61 = vadd.f32 %v1899_v3, %v234_v16  ;;  %v211_v63 = vmul.f32 %v1596_v27, %v1880_v57  ;;  %v231_v57 = vmul.f32 %v1895_v36, %v204_v62 }
 0x16b   :  { %v209_v21 = vmul.f32 %v1598_v19, %v1872_v55  ;;  %v260_v38 = vadd.f32 %v1903_v42, %v233_v20  ;;  %v210_v39 = vmul.f32 %v1596_v27, %v1876_v56  ;;  %v208_v5 = vmul.f32 %v1598_v19, %v1868_v23  ;;  %v1552_v56 = vld [vmem:[#allocation7 + $0x74] ss:$24 sps:$4 sm:$0xff]  }
 0x16c   :  { %999 = vmatpush1.bf16.msra.mxu0 %v1538_v59  ;;  %1416 = vmatpush1.bf16.msra.mxu1 %v1538_v59  ;;  %v271_v12 = vpack.c.bf16 %v261_v61, %v259_v15  ;;  %v238_v26 = vmul.f32 %v1893_v31, %v211_v63  ;;  %v258_v0 = vadd.f32 %v1903_v42, %v231_v57 }
 0x16d   :  { %1000 = vmatprep.subr.bf16.mxu0 %v1543_v28  ;;  %1401 = vmatprep.subr.bf16.mxu1 %v1543_v28  ;;  %v236_v55 = vmul.f32 %v1893_v31, %v209_v21  ;;  %v237_v31 = vmul.f32 %v1895_v36, %v210_v39  ;;  %v235_v23 = vmul.f32 %v1895_v36, %v208_v5 }
 0x16e   :  { %v265_v4 = vadd.f32 %v1899_v3, %v238_v26  ;;  %v1960_v44 = vpack.c.bf16 %v260_v38, %v258_v0 }
 0x16f   :  { %893 = vmatmul.mubr.bf16.gmra.mxu0 %v1946_v48  ;;  %966 = vmatmul.mubr.bf16.gmra.mxu1 %v1946_v48  ;;  %v263_v45 = vadd.f32 %v1899_v3, %v236_v55  ;;  %v264_v3 = vadd.f32 %v1903_v42, %v237_v31  ;;  %v262_v9 = vadd.f32 %v1903_v42, %v235_v23  ;;  %v1559_v42 = vld [vmem:[#allocation7 + $0x2e0] ss:$24 sps:$4 sm:$0xff]  }
 0x170   :  { %1001 = vmatpush1.bf16.msra.mxu0 %v1541_v14  ;;  %1417 = vmatpush1.bf16.msra.mxu1 %v1541_v14 }
 0x171   :  { %902 = vmatprep.mubr.bf16.mxu0 %v271_v12  ;;  %975 = vmatprep.mubr.bf16.mxu1 %v271_v12  ;;  %v1966_v33 = vpack.c.bf16 %v265_v4, %v263_v45  ;;  %v1973_v36 = vpack.c.bf16 %v264_v3, %v262_v9 }
 0x172   :  { %1002 = vmatprep.subr.bf16.mxu0 %v1546_v24  ;;  %1402 = vmatprep.subr.bf16.mxu1 %v1546_v24 }
 0x174   :  { %1003 = vmatpush1.bf16.msra.mxu0 %v1544_v30  ;;  %1418 = vmatpush1.bf16.msra.mxu1 %v1544_v30 }
 0x175   :  { %1004 = vmatprep.subr.bf16.mxu0 %v1549_v37  ;;  %1403 = vmatprep.subr.bf16.mxu1 %v1549_v37 }
 0x177   :  { %903 = vmatmul.mubr.bf16.gmra.mxu0 %v1960_v44  ;;  %976 = vmatmul.mubr.bf16.gmra.mxu1 %v1960_v44 }
 0x178   :  { %1005 = vmatpush1.bf16.msra.mxu0 %v1547_v43  ;;  %1419 = vmatpush1.bf16.msra.mxu1 %v1547_v43 }
 0x179   :  { %912 = vmatprep.mubr.bf16.mxu0 %v1966_v33  ;;  %985 = vmatprep.mubr.bf16.mxu1 %v1966_v33 }
 0x17a   :  { %1006 = vmatprep.subr.bf16.mxu0 %v1552_v56  ;;  %1404 = vmatprep.subr.bf16.mxu1 %v1552_v56 }
 0x17c   :  { %1007 = vmatpush1.bf16.msra.mxu0 %v1550_v32  ;;  %1420 = vmatpush1.bf16.msra.mxu1 %v1550_v32 }
 0x17d   :  { %1008 = vmatprep.subr.bf16.mxu0 %v1555_v46  ;;  %1405 = vmatprep.subr.bf16.mxu1 %v1555_v46 }
 0x17f   :  { %913 = vmatmul.mubr.bf16.gmra.mxu0 %v1973_v36  ;;  %986 = vmatmul.mubr.bf16.gmra.mxu1 %v1973_v36 }
 0x180   :  { %1009 = vmatpush1.bf16.msra.mxu0 %v1553_v2  ;;  %1421 = vmatpush1.bf16.msra.mxu1 %v1553_v2 }
 0x181   :  { %1028 = vmatprep.mubr.bf16.mxu0 %v1918_v52  ;;  %1048 = vmatprep.mubr.bf16.mxu1 %v271_v12  ;;  %v1568_v52 = vld [vmem:[#allocation7 + $0x250] ss:$24 sps:$4 sm:$0xff]  }
 0x182   :  { %1010 = vmatprep.subr.bf16.mxu0 %v1558_v10  ;;  %1406 = vmatprep.subr.bf16.mxu1 %v1558_v10 }
 0x184   :  { %1011 = vmatpush1.bf16.msra.mxu0 %v1556_v11  ;;  %1422 = vmatpush1.bf16.msra.mxu1 %v1556_v11 }
 0x185   :  { %1012 = vmatprep.subr.bf16.mxu0 %v1561_v7  ;;  %1407 = vmatprep.subr.bf16.mxu1 %v1561_v7 }
 0x188   :  { %1013 = vmatpush2.bf16.msra.mxu0 %v1559_v42  ;;  %1423 = vmatpush2.bf16.msra.mxu1 %v1559_v42 }
 0x189   :  { %1014 = vmatprep.subr.bf16.mxu0 %v1564_v50  ;;  %1408 = vmatprep.subr.bf16.mxu1 %v1564_v50 }
 0x18c   :  { %1015 = vmatpush2.bf16.msra.mxu0 %v1562_v6  ;;  %1424 = vmatpush2.bf16.msra.mxu1 %v1562_v6 }
 0x18d   :  { %1016 = vmatprep.subr.bf16.mxu0 %v1567_v1  ;;  %1409 = vmatprep.subr.bf16.mxu1 %v1567_v1 }
 0x190   :  { %1017 = vmatpush2.bf16.msra.mxu0 %v1565_v35  ;;  %1425 = vmatpush2.bf16.msra.mxu1 %v1565_v35 }
 0x191   :  { %1018 = vmatprep.subr.bf16.mxu0 %v1570_v51  ;;  %1410 = vmatprep.subr.bf16.mxu1 %v1570_v51 }
 0x194   :  { %1019 = vmatpush2.bf16.msra.mxu0 %v1568_v52  ;;  %1426 = vmatpush2.bf16.msra.mxu1 %v1568_v52 }
 0x195   :  { %1020 = vmatprep.subr.bf16.mxu0 %v1573_v53  ;;  %1411 = vmatprep.subr.bf16.mxu1 %v1573_v53 }
 0x198   :  { %1021 = vmatpush2.bf16.msra.mxu0 %v1571_v17  ;;  %1427 = vmatpush2.bf16.msra.mxu1 %v1571_v17 }
 0x199   :  { %1022 = vmatprep.subr.bf16.mxu0 %v1576_v8  ;;  %1412 = vmatprep.subr.bf16.mxu1 %v1576_v8 }
 0x19c   :  { %1023 = vmatpush2.bf16.msra.mxu0 %v1574_v18  ;;  %1428 = vmatpush2.bf16.msra.mxu1 %v1574_v18 }
 0x19d   :  { %1024 = vmatprep.subr.bf16.mxu0 %v1579_v22  ;;  %1413 = vmatprep.subr.bf16.mxu1 %v1579_v22 }
 0x1a0   :  { %1025 = vmatpush2.bf16.msra.mxu0 %v1577_v13  ;;  %1429 = vmatpush2.bf16.msra.mxu1 %v1577_v13 }
 0x1a1   :  { %1026 = vmatprep.subr.bf16.mxu0 %v1582_v40  ;;  %1414 = vmatprep.subr.bf16.mxu1 %v1582_v40 }
 0x1a4   :  { %1027 = vmatpush2.bf16.msra.mxu0 %v1580_v34  ;;  %1430 = vmatpush2.bf16.msra.mxu1 %v1580_v34 }
 0x1a7   :  { %1029 = vmatmul.mubr.bf16.vlgmr.msra.gmra.mxu0 %v1920_v54  ;;  %1049 = vmatmul.mubr.bf16.vlgmr.msra.gmra.mxu1 %v1960_v44 }
 0x1a8   :  { %1038 = vmatprep.mubr.bf16.mxu0 %v1933_v58  ;;  %1058 = vmatprep.mubr.bf16.mxu1 %v1966_v33 }
 0x1af   :  { %1039 = vmatmul.mubr.bf16.gmra.mxu0 %v1946_v48  ;;  %1059 = vmatmul.mubr.bf16.gmra.mxu1 %v1973_v36 }
 0x227   :  { %v884_v41 = vpop.f32.mrf.mxu0  ;;  %v957_v47 = vpop.f32.mrf.mxu1 }
 0x229   :  { %v886_v59 = vpop.f32.mrf.mxu0  ;;  %v959_v25 = vpop.f32.mrf.mxu1 }
 0x22a   :  { %v1375_v16 = vpack.c.bf16 %v886_v59, %v884_v41  ;;  %v1376_v27 = vpack.c.bf16 %v959_v25, %v957_v47 }
 0x22b   :  { %v888_v28 = vpop.f32.mrf.mxu0  ;;  %v961_v49 = vpop.f32.mrf.mxu1 }
 0x22c   :  { %1213 = vst [vmem:[#allocation8] sm:$0xff] %v1375_v16  ;;  %1214 = vst [vmem:[#allocation8 + $0x8] sm:$0xff] %v1376_v27 }
 0x22d   :  { %v890_v54 = vpop.f32.mrf.mxu0  ;;  %v963_v60 = vpop.f32.mrf.mxu1 }
 0x22e   :  { %v1378_v19 = vpack.c.bf16 %v890_v54, %v888_v28  ;;  %v1379_v58 = vpack.c.bf16 %v963_v60, %v961_v49 }
 0x22f   :  { %v894_v29 = vpop.f32.mrf.mxu0  ;;  %v967_v61 = vpop.f32.mrf.mxu1 }
 0x230   :  { %1216 = vst [vmem:[#allocation8 + $0x18] sm:$0xff] %v1378_v19  ;;  %1217 = vst [vmem:[#allocation8 + $0x20] sm:$0xff] %v1379_v58 }
 0x231   :  { %v896_v62 = vpop.f32.mrf.mxu0  ;;  %v969_v63 = vpop.f32.mrf.mxu1 }
 0x232   :  { %v1381_v14 = vpack.c.bf16 %v896_v62, %v894_v29  ;;  %v1382_v15 = vpack.c.bf16 %v969_v63, %v967_v61 }
 0x233   :  { %v898_v48 = vpop.f32.mrf.mxu0  ;;  %v971_v20 = vpop.f32.mrf.mxu1 }
 0x234   :  { %1219 = vst [vmem:[#allocation8 + $0x30] sm:$0xff] %v1381_v14  ;;  %1220 = vst [vmem:[#allocation8 + $0x38] sm:$0xff] %v1382_v15 }
 0x235   :  { %v900_v21 = vpop.f32.mrf.mxu0  ;;  %v973_v24 = vpop.f32.mrf.mxu1 }
 0x236   :  { %v1384_v12 = vpack.c.bf16 %v900_v21, %v898_v48  ;;  %v1385_v57 = vpack.c.bf16 %v973_v24, %v971_v20 }
 0x237   :  { %v904_v26 = vpop.f32.mrf.mxu0  ;;  %v977_v30 = vpop.f32.mrf.mxu1 }
 0x238   :  { %1222 = vst [vmem:[#allocation8 + $0x48] sm:$0xff] %v1384_v12  ;;  %1223 = vst [vmem:[#allocation8 + $0x50] sm:$0xff] %v1385_v57 }
 0x239   :  { %v906_v37 = vpop.f32.mrf.mxu0  ;;  %v979_v38 = vpop.f32.mrf.mxu1 }
 0x23a   :  { %v1387_v55 = vpack.c.bf16 %v906_v37, %v904_v26  ;;  %v1388_v39 = vpack.c.bf16 %v979_v38, %v977_v30 }
 0x23b   :  { %v908_v0 = vpop.f32.mrf.mxu0  ;;  %v981_v4 = vpop.f32.mrf.mxu1 }
 0x23c   :  { %1225 = vst [vmem:[#allocation8 + $0x60] sm:$0xff] %v1387_v55  ;;  %1226 = vst [vmem:[#allocation8 + $0x68] sm:$0xff] %v1388_v39 }
 0x23d   :  { %v910_v5 = vpop.f32.mrf.mxu0  ;;  %v983_v43 = vpop.f32.mrf.mxu1 }
 0x23e   :  { %v1390_v44 = vpack.c.bf16 %v910_v5, %v908_v0  ;;  %v1391_v45 = vpack.c.bf16 %v983_v43, %v981_v4 }
 0x23f   :  { %v914_v31 = vpop.f32.mrf.mxu0  ;;  %v987_v56 = vpop.f32.mrf.mxu1 }
 0x240   :  { %1228 = vst [vmem:[#allocation8 + $0x78] sm:$0xff] %v1390_v44  ;;  %1229 = vst [vmem:[#allocation8 + $0x80] sm:$0xff] %v1391_v45 }
 0x241   :  { %v916_v33 = vpop.f32.mrf.mxu0  ;;  %v989_v23 = vpop.f32.mrf.mxu1 }
 0x242   :  { %v1393_v32 = vpack.c.bf16 %v916_v33, %v914_v31  ;;  %v1394_v46 = vpack.c.bf16 %v989_v23, %v987_v56 }
 0x243   :  { %v918_v3 = vpop.f32.mrf.mxu0  ;;  %v991_v9 = vpop.f32.mrf.mxu1 }
 0x244   :  { %1231 = vst [vmem:[#allocation8 + $0x90] sm:$0xff] %v1393_v32  ;;  %1232 = vst [vmem:[#allocation8 + $0x98] sm:$0xff] %v1394_v46 }
 0x245   :  { %v920_v2 = vpop.f32.mrf.mxu0  ;;  %v993_v36 = vpop.f32.mrf.mxu1 }
 0x246   :  { %v1396_v10 = vpack.c.bf16 %v920_v2, %v918_v3  ;;  %v1397_v11 = vpack.c.bf16 %v993_v36, %v991_v9 }
 0x248   :  { %1234 = vst [vmem:[#allocation8 + $0xa8] sm:$0xff] %v1396_v10  ;;  %1235 = vst [vmem:[#allocation8 + $0xb0] sm:$0xff] %v1397_v11 }
 0x267   :  { %v1030_v7 = vpop.f32.mrf.mxu0  ;;  %v1050_v42 = vpop.f32.mrf.mxu1 }
 0x269   :  { %v1032_v50 = vpop.f32.mrf.mxu0  ;;  %v1052_v6 = vpop.f32.mrf.mxu1 }
 0x26a   :  { %v1377_v1 = vpack.c.bf16 %v1032_v50, %v1030_v7  ;;  %v1389_v35 = vpack.c.bf16 %v1052_v6, %v1050_v42 }
 0x26b   :  { %v1034_v51 = vpop.f32.mrf.mxu0  ;;  %v1054_v52 = vpop.f32.mrf.mxu1 }
 0x26c   :  { %1215 = vst [vmem:[#allocation8 + $0x10] sm:$0xff] %v1377_v1  ;;  %1227 = vst [vmem:[#allocation8 + $0x70] sm:$0xff] %v1389_v35 }
 0x26d   :  { %v1036_v53 = vpop.f32.mrf.mxu0  ;;  %v1056_v17 = vpop.f32.mrf.mxu1 }
 0x26e   :  { %v1380_v8 = vpack.c.bf16 %v1036_v53, %v1034_v51  ;;  %v1392_v18 = vpack.c.bf16 %v1056_v17, %v1054_v52 }
 0x26f   :  { %v1040_v22 = vpop.f32.mrf.mxu0  ;;  %v1060_v13 = vpop.f32.mrf.mxu1 }
 0x270   :  { %1218 = vst [vmem:[#allocation8 + $0x28] sm:$0xff] %v1380_v8  ;;  %1230 = vst [vmem:[#allocation8 + $0x88] sm:$0xff] %v1392_v18 }
 0x271   :  { %v1042_v40 = vpop.f32.mrf.mxu0  ;;  %v1062_v34 = vpop.f32.mrf.mxu1 }
 0x272   :  { %v1383_v41 = vpack.c.bf16 %v1042_v40, %v1040_v22  ;;  %v1395_v47 = vpack.c.bf16 %v1062_v34, %v1060_v13 }
 0x273   :  { %v1044_v59 = vpop.f32.mrf.mxu0  ;;  %v1064_v25 = vpop.f32.mrf.mxu1 }
 0x274   :  { %1221 = vst [vmem:[#allocation8 + $0x40] sm:$0xff] %v1383_v41  ;;  %1233 = vst [vmem:[#allocation8 + $0xa0] sm:$0xff] %v1395_v47 }
 0x275   :  { %v1046_v16 = vpop.f32.mrf.mxu0  ;;  %v1066_v27 = vpop.f32.mrf.mxu1 }
 0x276   :  { %v1386_v28 = vpack.c.bf16 %v1046_v16, %v1044_v59  ;;  %v1398_v49 = vpack.c.bf16 %v1066_v27, %v1064_v25 }
 0x278   :  { %1224 = vst [vmem:[#allocation8 + $0x58] sm:$0xff] %v1386_v28  ;;  %1236 = vst [vmem:[#allocation8 + $0xb8] sm:$0xff] %v1398_v49 }
 0x279   :  { %1670 = shalt.err (!%p1667_p5)
}
 0x27a   :  { %1248 = dma.vmem_to_hbm [thread:$0]  %s1243_s7, 3072, %s1994_s4, [#allocation4], %s1690_s1, %s1690_s1, %s1691_s30  }
 0x27b   :  { %1683 = dma.done.wait [#allocation4], 3072  }
 0x27c   :  { %1684 = vsyncadd [#allocation4], 4294964224 }
 0x27d   :  { %1252 = vsyncpa [#allocation3], 1 }
 0x27e   :  { %1253 = vsyncpa [#allocation6], 1 }
 0x27f   :  { %1254 = vsyncpa [#allocation4], 1 }

</bundles_post_ra>
